<compile_context>
chip_gen: v5e
topology: v5e:2x2
jax: 0.10.0
libtpu: 0.0.40
codegen_flags: <defaults>
</compile_context>

<pallas_src>
import functools
import math

import jax
import jax.numpy as jnp
import numpy as np
from jax import lax
from jax.experimental import pallas as pl
from jax.experimental.pallas import tpu as pltpu


_VMEM_LIMIT_BYTES = 32 * 1024 * 1024      # safe on v5e / v6e / v7x
_FUSED_BLOCK_BYTES_MAX = 2 * 1024 * 1024  # per-buffer cap for the fused path


def _eca_kernel_size(channel, b=1, gamma=2):
    k = int(abs((math.log(channel, 2) + b) / gamma))
    return k if k % 2 else k + 1


def _round_up(x, m):
    return (x + m - 1) // m * m


def _pick_hw_tile(HW, C, itemsize, target_bytes=1 << 20):
    """Largest multiple-of-128 divisor of HW giving ~<=1 MiB x blocks."""
    if HW % 128 != 0:
        return HW  # fall back to the full-extent exemption
    cands = [m * 128 for m in range(1, HW // 128 + 1) if HW % (m * 128) == 0]
    fit = [c for c in cands if C * c * itemsize <= target_bytes]
    return max(fit) if fit else min(cands)


def _pooled_gate(y_vec, w_ref, *, C, k):
    """k-tap zero-padded channel conv + sigmoid on the pooled channel means.

    y_vec: (1, C_pad) f32, channel means in lanes [0, C) (lanes >= C are zero).
    w_ref: SMEM (k,) f32 Conv1d(1, 1, k, bias=False) taps.
    Returns a (1, C_pad) f32 gate (lanes >= C are unused).
    """
    C_pad = y_vec.shape[-1]
    pad = (k - 1) // 2
    lane = lax.broadcasted_iota(jnp.int32, (1, C_pad), 1)
    conv = jnp.zeros_like(y_vec)
    for i in range(k):
        off = i - pad  # out[c] += w[i] * y[c + off]
        if off == 0:
            shifted = y_vec
        else:
            # jnp.roll semantics: shifted[c] = y_vec[(c + off) % C_pad].
            shifted = pltpu.roll(y_vec, (-off) % C_pad, axis=1)
        valid = jnp.logical_and(lane + off >= 0, lane + off < C)
        conv = conv + w_ref[i] * jnp.where(valid, shifted, 0.0)
    # Sigmoid gate: exp + reciprocal both run on the EUP (cold path, once per
    # batch element).  approx=True would be free too but loosens tolerance.
    return pl.reciprocal(1.0 + jnp.exp(-conv), approx=False)


# ----------------------- fused single-pass kernel --------------------------


def _eca_fused_kernel(x_ref, w_ref, o_ref, acc_ref, *, C, k, inv_hw):
    # x_ref/o_ref: (1, C, HW); w_ref: SMEM (k,); acc_ref: (1, C_pad) f32.
    x = x_ref[...]
    acc_ref[...] = jnp.zeros_like(acc_ref)
    acc_ref[:, 0:C] = jnp.sum(x.astype(jnp.float32), axis=-1) * inv_hw
    s = _pooled_gate(acc_ref[...], w_ref, C=C, k=k)        # (1, C_pad) f32
    gate = s[:, 0:C].astype(x.dtype)                       # (1, C)
    o_ref[...] = x * gate[:, :, None]                      # broadcast over HW


# ----------------------- two-pass tiled kernels -----------------------------


def _eca_pool_gate_kernel(x_ref, w_ref, s_ref, acc_ref, *, C, k, inv_hw):
    # x_ref: (1, C, hw_tile); s_ref: (1, C, 1) f32 gate (revisited across t);
    # acc_ref: (1, C_pad) f32 running sum.
    t = pl.program_id(1)

    @pl.when(t == 0)
    def _():
        acc_ref[...] = jnp.zeros_like(acc_ref)

    acc_ref[:, 0:C] = acc_ref[:, 0:C] + jnp.sum(
        x_ref[...].astype(jnp.float32), axis=-1)

    @pl.when(t == pl.num_programs(1) - 1)
    def _():
        y = acc_ref[...] * inv_hw
        s = _pooled_gate(y, w_ref, C=C, k=k)                # (1, C_pad) f32
        s_ref[...] = s[:, 0:C][:, :, None]                  # (1, C, 1)


def _eca_scale_kernel(x_ref, s_ref, o_ref):
    # x_ref/o_ref: (1, C, hw_tile); s_ref: (1, C, 1) f32.
    x = x_ref[...]
    o_ref[...] = x * s_ref[...].astype(x.dtype)


# ----------------------------- wrapper ---------------------------------------


def eca_block(x, conv_w, *, hw_tile=None, force_two_pass=False):
    """x: (N, C, H, W); conv_w: (k,) Conv1d(1,1,k,bias=False) weight."""
    N, C, H, W = x.shape
    HW = H * W
    k = int(conv_w.shape[0])
    C_pad = _round_up(C, 128)
    inv_hw = 1.0 / float(HW)

    x_flat = x.reshape(N, C, HW)
    conv_w = conv_w.astype(jnp.float32)
    itemsize = jnp.dtype(x.dtype).itemsize
    w_spec = pl.BlockSpec(memory_space=pltpu.MemorySpace.SMEM)

    single_pass = (not force_two_pass) and (C * HW * itemsize
                                            <= _FUSED_BLOCK_BYTES_MAX)

    if single_pass:
        out_flat = pl.pallas_call(
            functools.partial(_eca_fused_kernel, C=C, k=k, inv_hw=inv_hw),
            out_shape=jax.ShapeDtypeStruct((N, C, HW), x.dtype),
            grid=(N,),
            in_specs=[
                pl.BlockSpec((1, C, HW), lambda n: (n, 0, 0)),
                w_spec,
            ],
            out_specs=pl.BlockSpec((1, C, HW), lambda n: (n, 0, 0)),
            scratch_shapes=[pltpu.VMEM((1, C_pad), jnp.float32)],
            compiler_params=pltpu.CompilerParams(
                dimension_semantics=("parallel",),
                vmem_limit_bytes=_VMEM_LIMIT_BYTES),
        )(x_flat, conv_w)
        return out_flat.reshape(N, C, H, W)

    # ---- two-pass: pool/gate over lane-dense HW tiles, then multiply ----
    if hw_tile is None:
        hw_tile = _pick_hw_tile(HW, C, itemsize)
    assert HW % hw_tile == 0
    T = HW // hw_tile

    gate = pl.pallas_call(
        functools.partial(_eca_pool_gate_kernel, C=C, k=k, inv_hw=inv_hw),
        out_shape=jax.ShapeDtypeStruct((N, C, 1), jnp.float32),
        grid=(N, T),
        in_specs=[
            pl.BlockSpec((1, C, hw_tile), lambda n, t: (n, 0, t)),
            w_spec,
        ],
        out_specs=pl.BlockSpec((1, C, 1), lambda n, t: (n, 0, 0)),
        scratch_shapes=[pltpu.VMEM((1, C_pad), jnp.float32)],
        compiler_params=pltpu.CompilerParams(
            dimension_semantics=("parallel", "arbitrary"),
            vmem_limit_bytes=_VMEM_LIMIT_BYTES),
    )(x_flat, conv_w)

    out_flat = pl.pallas_call(
        _eca_scale_kernel,
        out_shape=jax.ShapeDtypeStruct((N, C, HW), x.dtype),
        grid=(N, T),
        in_specs=[
            pl.BlockSpec((1, C, hw_tile), lambda n, t: (n, 0, t)),
            pl.BlockSpec((1, C, 1), lambda n, t: (n, 0, 0)),
        ],
        out_specs=pl.BlockSpec((1, C, hw_tile), lambda n, t: (n, 0, t)),
        compiler_params=pltpu.CompilerParams(
            dimension_semantics=("parallel", "parallel"),
            vmem_limit_bytes=_VMEM_LIMIT_BYTES),
    )(x_flat, gate)
    return out_flat.reshape(N, C, H, W)


# ----------------------------- reference -------------------------------------


def _reference(x, conv_w):
    """Plain-JAX reference mirroring the PyTorch ECA_block forward."""
    N, C, H, W = x.shape
    k = conv_w.shape[0]
    pad = (k - 1) // 2
    y = x.astype(jnp.float32).mean(axis=(2, 3))                 # (N, C)
    ypad = jnp.pad(y, ((0, 0), (pad, pad)))
    yconv = sum(conv_w[t] * ypad[:, t:t + C] for t in range(k))
    s = 1.0 / (1.0 + jnp.exp(-yconv))
    return x * s[:, :, None, None].astype(x.dtype)


if __name__ == "__main__":
    key = jax.random.PRNGKey(0)
    kx, kw = jax.random.split(key)

    # C=16 -> Conv1d kernel_size = 3
    N, C, H, W = 2, 16, 16, 16
    x = jax.random.normal(kx, (N, C, H, W), dtype=jnp.float32)
    ks = _eca_kernel_size(C)
    conv_w = jax.random.normal(kw, (ks,), dtype=jnp.float32) * 0.5
    ref = _reference(x, conv_w)

    # Path 1: fused single-pass kernel (x slab fits VMEM -> 2x HBM traffic).
    out = jax.block_until_ready(eca_block(x, conv_w))
    np.testing.assert_allclose(np.asarray(out), np.asarray(ref),
                               rtol=1e-5, atol=1e-5)

    # Path 2: tiled two-pass kernels (128-lane HW tiles, pool-accumulate then
    # gate on the last tile, then streaming multiply).
    out2 = jax.block_until_ready(
        eca_block(x, conv_w, force_two_pass=True, hw_tile=128))
    np.testing.assert_allclose(np.asarray(out2), np.asarray(ref),
                               rtol=1e-5, atol=1e-5)

    # A second shape: C=128 -> kernel_size = 5 (exercises the +/-2 taps).
    N2, C2, H2, W2 = 2, 128, 8, 16
    x2 = jax.random.normal(kx, (N2, C2, H2, W2), dtype=jnp.float32)
    ks2 = _eca_kernel_size(C2)
    conv_w2 = jax.random.normal(kw, (ks2,), dtype=jnp.float32) * 0.5
    out3 = jax.block_until_ready(eca_block(x2, conv_w2))
    np.testing.assert_allclose(np.asarray(out3),
                               np.asarray(_reference(x2, conv_w2)),
                               rtol=1e-5, atol=1e-5)

    print("KERNEL_OK")
</pallas_src>

<mosaic_0001>
module attributes {stable_mosaic.version = 11 : i64} {
  func.func @_eca_fused_kernel(%arg0: i32, %arg1: memref<1x16x256xf32, #tpu.memory_space<vmem>>, %arg2: memref<3xf32, #tpu.memory_space<smem>>, %arg3: memref<1x16x256xf32, #tpu.memory_space<vmem>>, %arg4: memref<1x128xf32, #tpu.memory_space<vmem>>) attributes {dimension_semantics = [#tpu.dimension_semantics<parallel>], iteration_bounds = array<i64: 2>, scalar_prefetch = 0 : i64, scratch_operands = 1 : i64, tpu.core_type = #tpu.core_type<tc>, window_params = [{transform_indices = @transform_0, window_bounds = array<i64: 1, 16, 256>}, {transform_indices = @transform_1, window_bounds = array<i64: 3>}, {transform_indices = @transform_2, window_bounds = array<i64: 1, 16, 256>}]} {
    %c0 = arith.constant 0 : index
    %c0_0 = arith.constant 0 : index
    %c0_1 = arith.constant 0 : index
    %0 = vector.load %arg1[%c0, %c0_0, %c0_1] : memref<1x16x256xf32, #tpu.memory_space<vmem>>, vector<1x16x256xf32>
    %cst = arith.constant 0.000000e+00 : f32
    %1 = vector.broadcast %cst : f32 to vector<1x128xf32>
    %c0_2 = arith.constant 0 : index
    %c0_3 = arith.constant 0 : index
    %2 = vector.load %arg4[%c0_2, %c0_3] : memref<1x128xf32, #tpu.memory_space<vmem>>, vector<1x128xf32>
    tpu.vector_store %arg4[%c0_2, %c0_3], %1 {strides = array<i32>} : memref<1x128xf32, #tpu.memory_space<vmem>>, vector<1x128xf32>,
    %cst_4 = arith.constant dense<0.000000e+00> : vector<1x16xf32>
    %3 = vector.multi_reduction <add>, %0, %cst_4 [2] : vector<1x16x256xf32> to vector<1x16xf32>
    %cst_5 = arith.constant 3.906250e-03 : f32
    %4 = vector.broadcast %cst_5 : f32 to vector<1x16xf32>
    %5 = arith.mulf %3, %4 : vector<1x16xf32>
    %c0_6 = arith.constant 0 : index
    %c0_7 = arith.constant 0 : index
    %6 = vector.load %arg4[%c0_6, %c0_7] : memref<1x128xf32, #tpu.memory_space<vmem>>, vector<1x16xf32>
    tpu.vector_store %arg4[%c0_6, %c0_7], %5 {strides = array<i32>} : memref<1x128xf32, #tpu.memory_space<vmem>>, vector<1x16xf32>,
    %c0_8 = arith.constant 0 : index
    %c0_9 = arith.constant 0 : index
    %7 = vector.load %arg4[%c0_8, %c0_9] : memref<1x128xf32, #tpu.memory_space<vmem>>, vector<1x128xf32>
    %8 = tpu.iota {dimensions = array<i32: 1>} : vector<1x128xi32>
    %cst_10 = arith.constant 0.000000e+00 : f32
    %9 = vector.broadcast %cst_10 : f32 to vector<1x128xf32>
    %c1_i32 = arith.constant 1 : i32
    %10 = tpu.dynamic_rotate %7 by %c1_i32 dim 1 : vector<1x128xf32>, i32 -> vector<1x128xf32>
    %c-1_i32 = arith.constant -1 : i32
    %11 = vector.broadcast %c-1_i32 : i32 to vector<1x128xi32>
    %12 = arith.addi %8, %11 : vector<1x128xi32>
    %c0_i32 = arith.constant 0 : i32
    %13 = vector.broadcast %c0_i32 : i32 to vector<1x128xi32>
    %14 = arith.cmpi sge, %12, %13 : vector<1x128xi32>
    %c-1_i32_11 = arith.constant -1 : i32
    %15 = vector.broadcast %c-1_i32_11 : i32 to vector<1x128xi32>
    %16 = arith.addi %8, %15 : vector<1x128xi32>
    %c16_i32 = arith.constant 16 : i32
    %17 = vector.broadcast %c16_i32 : i32 to vector<1x128xi32>
    %18 = arith.cmpi slt, %16, %17 : vector<1x128xi32>
    %19 = arith.andi %14, %18 : vector<1x128xi1>
    %c0_12 = arith.constant 0 : index
    %20 = memref.load %arg2[%c0_12] : memref<3xf32, #tpu.memory_space<smem>>
    %cst_13 = arith.constant 0.000000e+00 : f32
    %21 = vector.broadcast %cst_13 : f32 to vector<1x128xf32>
    %22 = arith.select %19, %10, %21 : vector<1x128xi1>, vector<1x128xf32>
    %23 = vector.broadcast %20 : f32 to vector<1x128xf32>
    %24 = arith.mulf %23, %22 : vector<1x128xf32>
    %25 = arith.addf %9, %24 : vector<1x128xf32>
    %c0_i32_14 = arith.constant 0 : i32
    %26 = vector.broadcast %c0_i32_14 : i32 to vector<1x128xi32>
    %27 = arith.addi %8, %26 : vector<1x128xi32>
    %c0_i32_15 = arith.constant 0 : i32
    %28 = vector.broadcast %c0_i32_15 : i32 to vector<1x128xi32>
    %29 = arith.cmpi sge, %27, %28 : vector<1x128xi32>
    %c0_i32_16 = arith.constant 0 : i32
    %30 = vector.broadcast %c0_i32_16 : i32 to vector<1x128xi32>
    %31 = arith.addi %8, %30 : vector<1x128xi32>
    %c16_i32_17 = arith.constant 16 : i32
    %32 = vector.broadcast %c16_i32_17 : i32 to vector<1x128xi32>
    %33 = arith.cmpi slt, %31, %32 : vector<1x128xi32>
    %34 = arith.andi %29, %33 : vector<1x128xi1>
    %c1 = arith.constant 1 : index
    %35 = memref.load %arg2[%c1] : memref<3xf32, #tpu.memory_space<smem>>
    %cst_18 = arith.constant 0.000000e+00 : f32
    %36 = vector.broadcast %cst_18 : f32 to vector<1x128xf32>
    %37 = arith.select %34, %7, %36 : vector<1x128xi1>, vector<1x128xf32>
    %38 = vector.broadcast %35 : f32 to vector<1x128xf32>
    %39 = arith.mulf %38, %37 : vector<1x128xf32>
    %40 = arith.addf %25, %39 : vector<1x128xf32>
    %c127_i32 = arith.constant 127 : i32
    %41 = tpu.dynamic_rotate %7 by %c127_i32 dim 1 : vector<1x128xf32>, i32 -> vector<1x128xf32>
    %c1_i32_19 = arith.constant 1 : i32
    %42 = vector.broadcast %c1_i32_19 : i32 to vector<1x128xi32>
    %43 = arith.addi %8, %42 : vector<1x128xi32>
    %c0_i32_20 = arith.constant 0 : i32
    %44 = vector.broadcast %c0_i32_20 : i32 to vector<1x128xi32>
    %45 = arith.cmpi sge, %43, %44 : vector<1x128xi32>
    %c1_i32_21 = arith.constant 1 : i32
    %46 = vector.broadcast %c1_i32_21 : i32 to vector<1x128xi32>
    %47 = arith.addi %8, %46 : vector<1x128xi32>
    %c16_i32_22 = arith.constant 16 : i32
    %48 = vector.broadcast %c16_i32_22 : i32 to vector<1x128xi32>
    %49 = arith.cmpi slt, %47, %48 : vector<1x128xi32>
    %50 = arith.andi %45, %49 : vector<1x128xi1>
    %c2 = arith.constant 2 : index
    %51 = memref.load %arg2[%c2] : memref<3xf32, #tpu.memory_space<smem>>
    %cst_23 = arith.constant 0.000000e+00 : f32
    %52 = vector.broadcast %cst_23 : f32 to vector<1x128xf32>
    %53 = arith.select %50, %41, %52 : vector<1x128xi1>, vector<1x128xf32>
    %54 = vector.broadcast %51 : f32 to vector<1x128xf32>
    %55 = arith.mulf %54, %53 : vector<1x128xf32>
    %56 = arith.addf %40, %55 : vector<1x128xf32>
    %cst_24 = arith.constant 0.000000e+00 : f32
    %57 = vector.broadcast %cst_24 : f32 to vector<1x128xf32>
    %58 = arith.subf %57, %56 : vector<1x128xf32>
    %59 = math.exp %58 : vector<1x128xf32>
    %cst_25 = arith.constant 1.000000e+00 : f32
    %60 = vector.broadcast %cst_25 : f32 to vector<1x128xf32>
    %61 = arith.addf %60, %59 : vector<1x128xf32>
    %62 = tpu.reciprocal %61 : vector<1x128xf32> -> vector<1x128xf32>
    %63 = vector.extract_strided_slice %62 {offsets = [0, 0], sizes = [1, 16], strides = [1, 1]} : vector<1x128xf32> to vector<1x16xf32>
    %64 = vector.shape_cast %63 : vector<1x16xf32> to vector<1x16x1xf32>
    %65 = vector.broadcast %64 : vector<1x16x1xf32> to vector<1x16x256xf32>
    %66 = arith.mulf %0, %65 : vector<1x16x256xf32>
    %c0_26 = arith.constant 0 : index
    %c0_27 = arith.constant 0 : index
    %c0_28 = arith.constant 0 : index
    %67 = vector.load %arg3[%c0_26, %c0_27, %c0_28] : memref<1x16x256xf32, #tpu.memory_space<vmem>>, vector<1x16x256xf32>
    tpu.vector_store %arg3[%c0_26, %c0_27, %c0_28], %66 {strides = array<i32>} : memref<1x16x256xf32, #tpu.memory_space<vmem>>, vector<1x16x256xf32>,
    return
  }
  func.func @transform_0(%arg0: i32) -> (i32, i32, i32) {
    %c0_i32 = arith.constant 0 : i32
    %c0_i32_0 = arith.constant 0 : i32
    %c0_i32_1 = arith.constant 0 : i32
    return %arg0, %c0_i32, %c0_i32_0 : i32, i32, i32
  }
  func.func @transform_1(%arg0: i32) -> i32 {
    %c0_i32 = arith.constant 0 : i32
    %c0_i32_0 = arith.constant 0 : i32
    return %c0_i32 : i32
  }
  func.func @transform_2(%arg0: i32) -> (i32, i32, i32) {
    %c0_i32 = arith.constant 0 : i32
    %c0_i32_0 = arith.constant 0 : i32
    %c0_i32_1 = arith.constant 0 : i32
    return %arg0, %c0_i32, %c0_i32_0 : i32, i32, i32
  }
}

</mosaic_0001>

<bundles_post_ra>
// kernel: tpu_custom_call.1
= control target key start
LH: loop header
LB: loop body
LE: loop exit
PB: predicated region body
PF: predicated region fallthrough
CT: control target
= control target key end

     0   :  { %7 = vsyncpa [#allocation4], 0  ;;  %s767_s0 = inlined_call_operand.hbm [shape: f32[2,16,256], index: 0, kind: input, shape index: {}]   ;;  %s768_s1 = inlined_call_operand.hbm [shape: f32[3], index: 1, kind: input, shape index: {}]   ;;  %s769_s2 = inlined_call_operand.hbm [shape: f32[2,16,256], index: 2, kind: output, shape index: {}]  }
   0x1   :  { %9 = vsyncpa [#allocation4 + $0x1], 0 }
   0x2   :  { %10 = vsyncpa [#allocation6], 0 }
   0x3   :  { %11 = vsyncpa [#allocation5], 0 }
   0x4   :  { %13 = vsyncpa [#allocation5 + $0x1], 0  ;;  %s605_s9 = smov 0   ;;  %s607_s10 = smov 0  }
   0x5   :  { %s609_s11 = smov 0   ;;  %s611_s12 = smov 0  }
   0x6 LB: > { %s626_s13 = sadd.s32 4294967295, %s580_s12   ;;  %s374_s14 = sadd.s32 4294967294, %s580_s12   ;;  %s580_s12 = sphi %s611_s12, %s780_s12   ;;  %s576_s11 = sphi %s609_s11, %s779_s11   ;;  %s572_s10 = sphi %s607_s10, %s778_s10   ;;  %s568_s9 = sphi %s605_s9, %s777_s9  }
   0x7   : > { %s630_s15 = sadd.s32 1, %s580_s12   ;;  %s26_s16 = sadd.s32 1, %s576_s11 }
   0x8   : > { %s23_s17 = ssub.s32 %s580_s12, %s630_s15  ;;  %p33_p0 = scmp.ne.s32.totalorder %s576_s11, %s572_s10 }
   0x9   : > { %p24_p1 = scmp.eq.s32.totalorder %s23_s17, 0  ;;  %p34_p2 = scmp.eq.s32.totalorder %s580_s12, 0 }
   0xa   : > { %p39_p3 = scmp.ne.s32.totalorder %s572_s10, %s568_s9  ;;  %p40_p4 = scmp.eq.s32.totalorder %s626_s13, 0 }
   0xb   : > { %s642_s18 = scalar_select %p24_p1, %s576_s11, %s26_s16  }
   0xc   : > { %p644_p5 = por %p34_p2, %p33_p0  ;;  %p650_p6 = por %p40_p4, %p39_p3 }
   0xd   : > { %p84_p7 = scmp.eq.s32.totalorder %s626_s13, 1  ;;  %p90_p8 = scmp.eq.s32.totalorder %s374_s14, 1 }
   0xe   : > { %p375_p9 = scmp.ge.s32.totalorder %s580_s12, 1  ;;  %p97_p10 = scmp.lt.s32.totalorder %s580_s12, 3 }
   0xf   : > { %p657_p11 = por %p84_p7, %p33_p0  ;;  %p661_p12 = por %p90_p8, %p39_p3 }
  0x10   : > { %p665_p13 = pnand %p375_p9, %p97_p10  ;;  %s109_s26 = sshll.u32 %s768_s1, 4  ;;  %s110_s26 = int_to_ptr.hbm [resolvable:$true] %s109_s26 }
  0x11   : > { %p415_p2 = scmp.lt.s32.totalorder %s580_s12, 2  ;;  %s120_s27 = sand.u32 1, %s576_s11  }
  0x12   : > { %p402_p1 = pneg %p665_p13  ;;  %s378_s29 = sshll.u32 %s120_s27, 5 }
  0x13   : > { %p681_p3 = pnand %p415_p2, %p644_p5  ;;  %s582_s30 = smov [#allocation7]  }
  0x14   : > { %p403_p7 = pnand %p402_p1, %p40_p4  ;;  %s392_s3 = sshll.u32 %s580_s12, 5 }
  0x15   : > { %s124_s4 = scalar_lea.vmem [#allocation3], %s378_s29  ;;  %s129_s8 = scalar_lea.hbm %s767_s0, %s392_s3 }
  0x16   : > { %405 = dma.hbm_to_smem (!%p403_p7), %s110_s26, 16, %s582_s30, [#allocation6]  }
  0x17   : > { %s132_s5 = sshll.u32 %s124_s4, 4  ;;  %s130_s14 = sshll.u32 %s129_s8, 4  ;;  %s133_s5 = int_to_ptr.vmem [resolvable:$true] %s132_s5  ;;  %s131_s14 = int_to_ptr.hbm [resolvable:$true] %s130_s14 }
  0x18   : > { %s121_s16 = scalar_lea.sflag [#allocation4], %s120_s27  ;;  %s480_s17 = sshra.s32 %s131_s14, 4  ;;  %s481_s17 = int_to_ptr.hbm [resolvable:$true] %s480_s17 }
  0x19   : > { %s482_s19 = scalar_lea.hbm %s481_s17, 32  ;;  %p484_p8 = pneg %p681_p3 }
  0x1a   : > { %p483_p5 = scmp.ne.s32.totalorder %s481_s17, %s482_s19  ;;  %s487_s26 = scalar_lea.hbm %s767_s0, 64 }
  0x1b   : > { %p488_p1 = scmp.lt.s32.totalorder %s481_s17, %s767_s0  ;;  %p489_p2 = scmp.lt.s32.totalorder %s487_s26, %s482_s19 }
  0x1c   : > { %p485_p9 = pnand %p484_p8, %p483_p5 }
  0x1d   : > { %p490_p7 = por %p489_p2, %p488_p1 }
  0x1e   : > { %p486_p10 = pneg %p485_p9 }
  0x20   : > { %p491_p0 = pnand %p490_p7, %p486_p10 }
  0x22   : > { %494 = shalt.err (!%p491_p0)
}
  0x23   : > { %s583_s27 = smov 256   ;;  %s584_s3 = smov 16  }
  0x24   : > { %409 = dma.hbm_to_vmem [thread:$0]  (!%p681_p3), %s131_s14, 512, %s133_s5, %s121_s16, %s583_s27, %s583_s27, %s584_s3  }
  0x25   : > { %144 = sbr.rel (%p665_p13) target bundleno = 461 (0x1cd), region = 28  ;;  %s702_s4 = sand.u32 (!%p665_p13), 1, %s572_s10  }
  0x26   : > { %s382_s6 = sshll.u32 (!%p665_p13), %s702_s4, 5  ;;  %s147_s7 = scalar_lea.sflag (!%p665_p13), [#allocation4], %s702_s4 }
  0x27   : > { %s150_s8 = scalar_lea.vmem (!%p665_p13), [#allocation3], %s382_s6 }
  0x2a   : > { %555 = dma.done.wait (%p650_p6), %s147_s7, 512  }
  0x2b   : > { %557 = vsyncadd (%p650_p6), %s147_s7, 4294966784 }
  0x2c   : > { %559 = dma.done.wait (%p40_p4), [#allocation6], 16  }
  0x2d   : > { %561 = vsyncadd (%p40_p4), [#allocation6], 4294967280 }
  0x2e   : > { %161 = sfence }
  0x2f   : > { %v716_v0 = vld [vmem:[%s150_s8] sm:$0xff]  ;;  %v718_v1 = vld [vmem:[%s150_s8 + $0x8] sm:$0xff]  ;;  %v722_v3 = vld [vmem:[%s150_s8 + $0x10] sm:$0xff]  ;;  %v585_v6 = vmov 0.0   ;;  %v193_v8 = vlaneseq  ;;  %vm198_vm0 = vcmask 130112   ;;  %vm201_vm1 = vcmask 122880  }
  0x30   : > { %v183_v2 = vadd.f32 %v718_v1, %v716_v0  ;;  %v724_v4 = vld [vmem:[%s150_s8 + $0x18] sm:$0xff]  ;;  %182 = vst [vmem:[#allocation2] sm:$0x1] %v585_v6  ;;  %s586_s20 = smov 1   ;;  %s587_s23 = smov 127  }
  0x31   : > { %v186_v5 = vadd.f32 %v724_v4, %v722_v3  ;;  %v194_v9 = vand.u32 127, %v193_v8  ;;  %s210_s28 = sld [smem:[#allocation7]]  ;;  %v254_v19 = vshrl.u32 %v193_v8, 7  ;;  %s177_s16 = scalar_lea.vmem [#allocation8], %s382_s6 }
  0x32   : > { %184 = vadd.xlane.f32.xlu0 %v183_v2  ;;  %s385_s5 = sld [smem:[#allocation7 + $0x1]]  ;;  %s393_s17 = sshll.u32 %s626_s13, 5 }
  0x33   : > { %v196_v11 = vadd.s32 4294967288, %v194_v9  ;;  %v206_v18 = vadd.s32 4294967295, %v194_v9  ;;  %458 = vset.pattern.permute.xlu2 %v254_v19  ;;  %v261_v20 = vadd.s32 8, %v254_v19  ;;  %s386_s14 = sld [smem:[#allocation7 + $0x2]]  ;;  %vm216_vm5 = vcmp.lt.s32.totalorder %v194_v9, 16  ;;  %s285_s25 = scalar_lea.hbm %s769_s2, %s393_s17 }
  0x34   : > { %v225_v22 = vadd.s32 1, %v194_v9  ;;  %s286_s26 = sshll.u32 %s177_s16, 4  ;;  %s288_s29 = sshll.u32 %s285_s25, 4  ;;  %s287_s26 = int_to_ptr.vmem [resolvable:$true] %s286_s26  ;;  %s289_s29 = int_to_ptr.hbm [resolvable:$true] %s288_s29 }
  0x35   : > { %vm207_vm2 = vcmp.ge.s32.totalorder %v206_v18, 0  ;;  %vm208_vm3 = vcmp.lt.s32.totalorder %v206_v18, 16  ;;  %460 = vset.pattern.permute.xlu0 %v261_v20  ;;  %s274_s30 = scalar_lea.sflag [#allocation5], %s702_s4  ;;  %s524_s27 = sshra.s32 %s289_s29, 4  ;;  %s525_s27 = int_to_ptr.hbm [resolvable:$true] %s524_s27 }
  0x36   : > { %vm209_vm4 = vmand %vm207_vm2, %vm208_vm3  ;;  %vm227_vm6 = vcmp.lt.s32.totalorder %v225_v22, 16  ;;  %s526_s13 = scalar_lea.hbm %s525_s27, 32  ;;  %s530_s7 = scalar_lea.hbm %s769_s2, 64 }
  0x37   : > { %v212_v23 = vstv %s210_s28  ;;  %p527_p4 = scmp.ne.s32.totalorder %s525_s27, %s526_s13  ;;  %p531_p0 = scmp.lt.s32.totalorder %s525_s27, %s769_s2 }
  0x38   : > { %v220_v25 = vstv %s385_s5  ;;  %p532_p3 = scmp.lt.s32.totalorder %s530_s7, %s526_s13 }
  0x39   : > { %v231_v28 = vstv %s386_s14  ;;  %p528_p6 = pnand %p527_p4, %p657_p11 }
  0x3a   : > { %187 = vadd.xlane.f32.xlu0 %v186_v5  ;;  %p533_p5 = por %p532_p3, %p531_p0 }
  0x3b   : > { %p529_p13 = pneg %p528_p6 }
  0x3d   : > { %p534_p8 = pnand %p533_p5, %p529_p13 }
  0xa5   : > { %v185_v7 = vpop.xlane.xlu0 %184 }
  0xa6   : > { %v189_v10 = vmul.f32 0.00390625, %v185_v7 }
  0xa8   : > { %v195_v14 = vperm.slane %v189_v10, %v194_v9 }
  0xad   : > { %v188_v12 = vpop.xlane.xlu0 %187 }
  0xae   : > { %v190_v13 = vmul.f32 0.00390625, %v188_v12 }
  0xb0   : > { %v197_v15 = vperm.slane %v190_v13, %v196_v11 }
  0xb2   : > { %v199_v16 = vsel %vm198_vm0, %v197_v15, %v195_v14 }
  0xb3   : > { %202 = vst.msk [vmem:[#allocation2] sm:$0x1] %vm201_vm1, %v199_v16 }
  0xba   : > { %v203_v17 = vld [vmem:[#allocation2] sm:$0x1] }
  0xbb   : > { %204 = vrot.lane.b32.xlu1 %v203_v17, %s586_s20  ;;  %v219_v26 = vsel %vm216_vm5, %v203_v17, 0.0 }
  0xbc   : > { %v221_v29 = vmul.f32 %v220_v25, %v219_v26 }
  0xc3   : > { %223 = vrot.lane.b32.xlu1 %v203_v17, %s587_s23 }
 0x12d   : > { %v205_v21 = vpop.permute.xlu1 %204 }
 0x12e   : > { %v211_v24 = vsel %vm209_vm4, %v205_v21, 0.0 }
 0x12f   : > { %v213_v27 = vmul.f32 %v212_v23, %v211_v24 }
 0x131   : > { %v222_v32 = vadd.f32 %v221_v29, %v213_v27 }
 0x135   : > { %v224_v30 = vpop.permute.xlu1 %223 }
 0x136   : > { %v230_v31 = vsel %vm227_vm6, %v224_v30, 0.0 }
 0x137   : > { %v232_v33 = vmul.f32 %v231_v28, %v230_v31 }
 0x139   : > { %v233_v34 = vadd.f32 %v232_v33, %v222_v32 }
 0x13b   : > { %v234_v35 = vsub.f32 0.0, %v233_v34 }
 0x13d   : > { %v235_v36 = vmul.f32 1.442695, %v234_v35 }
 0x13f   : > { %461 = vpow2.f32 %v235_v36 }
 0x145   : > { %v462_v37 = vpop.eup %461 }
 0x146   : > { %v237_v38 = vadd.f32 1.0, %v462_v37 }
 0x148   : > { %463 = vrcp.f32 %v237_v38  ;;  %v249_v42 = vand.u32 2147483648, %v237_v38  ;;  %v247_v44 = vand.u32 2147483647, %v237_v38  ;;  %vm243_vm8 = vweird.f32 %v237_v38 }
 0x14a   : > { %v250_v46 = vor.u32 1.1754944e-38, %v249_v42  ;;  %vm248_vm10 = vcmp.eq.f32.partialorder %v247_v44, 8.507059e+37 }
 0x14e   : > { %v464_v39 = vpop.eup %463 }
 0x14f   : > { %v239_v40 = vmul.f32 %v464_v39, %v237_v38  ;;  %vm244_vm7 = vweird.f32 %v464_v39 }
 0x150   : > { %vm245_vm9 = vmor %vm243_vm8, %vm244_vm7 }
 0x151   : > { %v240_v41 = vsub.f32 1.0, %v239_v40 }
 0x153   : > { %v241_v43 = vmul.f32 %v464_v39, %v240_v41 }
 0x155   : > { %v242_v45 = vadd.f32 %v464_v39, %v241_v43 }
 0x157   : > { %v246_v47 = vsel %vm245_vm9, %v464_v39, %v242_v45 }
 0x158   : > { %v251_v48 = vsel %vm248_vm10, %v250_v46, %v246_v47 }
 0x159   : > { %v252_v49 = vperm.slane %v251_v48, 0 }
 0x15b   : > { %257 = vperm.xlu2 %458, %v252_v49  }
 0x163   : > { %459 = vset.pattern.permute.xlu2 %v261_v20 }
 0x16b   : > { %263 = vperm.xlu2 %459, %v252_v49  }
 0x1b5   : > { %v258_v50 = vpop.permute.xlu2 %257 }
 0x1b6   : > { %v265_v51 = vmul.f32 %v258_v50, %v716_v0  ;;  %v266_v52 = vmul.f32 %v258_v50, %v718_v1 }
 0x1b8   : > { %269 = vst [vmem:[%s177_s16] sm:$0xff] %v265_v51 }
 0x1b9   : > { %270 = vst [vmem:[%s177_s16 + $0x8] sm:$0xff] %v266_v52 }
 0x1c5   : > { %v264_v53 = vpop.permute.xlu2 %263 }
 0x1c6   : > { %v267_v54 = vmul.f32 %v264_v53, %v722_v3  ;;  %v268_v55 = vmul.f32 %v264_v53, %v724_v4 }
 0x1c8   : > { %271 = vst [vmem:[%s177_s16 + $0x10] sm:$0xff] %v267_v54 }
 0x1c9   : > { %272 = vst [vmem:[%s177_s16 + $0x18] sm:$0xff] %v268_v55 }
 0x1ca   : > { %537 = shalt.err (!%p534_p8)
}
 0x1cb   : > { %s588_s4 = smov 256   ;;  %s589_s23 = smov 16  }
 0x1cc   : > { %400 = dma.vmem_to_hbm [thread:$0]  (%p657_p11), %s287_s26, 512, %s289_s29, %s274_s30, %s588_s4, %s588_s4, %s589_s23  }
 0x1cd PF: > { %s303_s28 = sand.u32 1, %s568_s9   ;;  %p776_p9 = scmp.ge.s32.totalorder %s580_s12, 2 }
 0x1ce   : > { %s304_s5 = scalar_lea.sflag [#allocation5], %s303_s28 }
 0x1cf   : > { %p411_p10 = pnand %p776_p9, %p661_p12 }
 0x1d1   : > { %p412_p1 = pneg %p411_p10 }
 0x1d3   : > { %563 = dma.done.wait (%p412_p1), %s304_s5, 512  }
 0x1d4   : > { %565 = vsyncadd (%p412_p1), %s304_s5, 4294966784  ;;  %p16_p2 = scmp.ge.s32.totalorder %s630_s15, 4   ;;  %s777_s9 = smov %s572_s10 }
 0x1d5   : > { %s778_s10 = smov %s576_s11  ;;  %s779_s11 = smov %s642_s18 }
 0x1d6   : > { %s780_s12 = smov %s630_s15  ;;  %18 = sbr.rel (!%p16_p2) target bundleno = 6 (0x6), region = 78 }
 0x1db   :  { %310 = vsyncpa [#allocation4], 1 }
 0x1dc   :  { %312 = vsyncpa [#allocation4 + $0x1], 1 }
 0x1dd   :  { %313 = vsyncpa [#allocation5], 1 }
 0x1de   :  { %315 = vsyncpa [#allocation5 + $0x1], 1 }
 0x1df   :  { %316 = vsyncpa [#allocation6], 1 }
 0x1e0   :  { %318 = vsyncpa [#allocation6 + $0x1], 1 }

</bundles_post_ra>
